<compile_context>
chip_gen: v5e
topology: v5e:2x2
jax: 0.10.0
libtpu: 0.0.40
codegen_flags: <defaults>
</compile_context>

<pallas_src>
import functools

import jax
import jax.numpy as jnp
from jax.experimental import pallas as pl
from jax.experimental.pallas import tpu as pltpu


def _fusion_kernel(nheads, head_dim, dot_or_add, need_attn,
                   tgt_ref, qpos_ref, mem_ref, mpos_ref, bias_ref,
                   wq_ref, bq_ref, wk_ref, bk_ref, wv_ref, bv_ref,
                   wo_ref, bo_ref,
                   out_ref, *rest):
    if need_attn:
        attn_ref, ctx_sc = rest
    else:
        attn_ref = None
        (ctx_sc,) = rest

    f32 = jnp.float32
    bf16 = jnp.bfloat16
    C = head_dim

    # Position-embedded activations (bf16 for the MXU).  tgt is f32 (needed
    # for the final gate); memory / pos / query_pos arrive already in bf16.
    q_in = (tgt_ref[0] + qpos_ref[0].astype(f32)).astype(bf16)       # (tq, D)
    k_in = mem_ref[0] + mpos_ref[0]                                   # (S_m, D) bf16
    v_in = mem_ref[0]                                                 # (S_m, D) bf16

    # Full-width projections: one (S, D) @ (D, D) MXU matmul each.
    # Softmax scale is pre-folded into wq / bq on the host.
    q = jnp.dot(q_in, wq_ref[...], preferred_element_type=f32) + bq_ref[...]   # (tq, D)
    k = jnp.dot(k_in, wk_ref[...], preferred_element_type=f32) + bk_ref[...]   # (S_m, D)
    v = jnp.dot(v_in, wv_ref[...], preferred_element_type=f32) + bv_ref[...]   # (S_m, D)

    q_bf = q.astype(bf16)
    k_bf = k.astype(bf16)
    v_bf = v.astype(bf16)
    bias = bias_ref[0]                                                # (1, S_m) additive mask

    attn_acc = None
    # Static (unrolled) head loop: per-head work is static lane slices plus
    # small matmuls; the LLO scheduler interleaves them freely.
    for h in range(nheads):
        sl = slice(h * C, (h + 1) * C)
        # logits = q_h @ k_h^T as an 'NT' MXU contraction (no XLU transpose).
        logits = jax.lax.dot_general(
            q_bf[:, sl], k_bf[:, sl],
            (((1,), (1,)), ((), ())), preferred_element_type=f32) + bias      # (tq, S_m)

        m = jnp.max(logits, axis=-1, keepdims=True)
        e = jnp.exp(logits - m)
        s = jnp.sum(e, axis=-1, keepdims=True)
        p = e * pl.reciprocal(s, approx=True)                                  # (tq, S_m)

        # Per-head context goes into its C-lane slice of the concat scratch.
        ctx_h = jnp.dot(p.astype(bf16), v_bf[:, sl],
                        preferred_element_type=f32)                            # (tq, C)
        ctx_sc[:, sl] = ctx_h.astype(bf16)

        if need_attn:
            attn_acc = p if attn_acc is None else attn_acc + p

    # Output projection: a single full-K (tq, D) @ (D, D) matmul.
    tgt2 = jnp.dot(ctx_sc[...], wo_ref[...], preferred_element_type=f32) + bo_ref[...]

    if dot_or_add == "add":
        out_ref[0] = tgt_ref[0] + tgt2
    else:                                  # 'dot'
        out_ref[0] = tgt_ref[0] * tgt2

    if need_attn:
        attn_ref[0] = attn_acc * (1.0 / nheads)   # head-averaged attention weights


def vision_language_fusion(tgt, memory, params, nheads,
                           memory_key_padding_mask=None, pos=None,
                           query_pos=None, dot_or_add="dot",
                           need_attn=True, tq=None):
    """Batch-first port of VisionLanguageFusionModule.forward."""
    B, S_t, D = tgt.shape
    S_m = memory.shape[1]
    assert D % nheads == 0
    C = D // nheads
    scale = C ** -0.5

    if tq is None:
        tq = S_t
    assert S_t % tq == 0
    n_tq = S_t // tq

    bf16 = jnp.bfloat16
    tgt = tgt.astype(jnp.float32)
    qpos_bf = (jnp.zeros((B, S_t, D), bf16) if query_pos is None
               else query_pos.astype(bf16))
    mem_bf = memory.astype(bf16)
    mpos_bf = (jnp.zeros((B, S_m, D), bf16) if pos is None
               else pos.astype(bf16))

    if memory_key_padding_mask is None:
        mask_bias = jnp.zeros((B, 1, S_m), jnp.float32)
    else:
        # NOTE: a fully-masked row yields a uniform distribution over padded
        # keys here (PyTorch gives NaN for that degenerate case).
        mask_bias = jnp.where(memory_key_padding_mask, -1e30, 0.0)
        mask_bias = mask_bias.astype(jnp.float32).reshape(B, 1, S_m)

    # PyTorch-layout parameters -> transposed, bf16 kernel weights.
    ipw = params["in_proj_weight"].astype(jnp.float32)    # (3D, D): [Wq; Wk; Wv], (out, in)
    ipb = params["in_proj_bias"].astype(jnp.float32)      # (3D,)
    Wq, Wk, Wv = ipw[:D], ipw[D:2 * D], ipw[2 * D:]
    bq, bk, bv = ipb[:D], ipb[D:2 * D], ipb[2 * D:]

    wq_t = (Wq.T * scale).astype(bf16)                    # fold softmax scale into q proj
    bq_s = (bq * scale).reshape(1, D)
    wk_t = Wk.T.astype(bf16)
    bk_r = bk.reshape(1, D)
    wv_t = Wv.T.astype(bf16)
    bv_r = bv.reshape(1, D)
    wo_t = params["out_proj_weight"].astype(jnp.float32).T.astype(bf16)   # (D, D)
    bo = params["out_proj_bias"].astype(jnp.float32).reshape(1, D)

    kernel = functools.partial(_fusion_kernel, nheads, C, dot_or_add, need_attn)

    tile_spec = pl.BlockSpec((1, tq, D), lambda b, i: (b, i, 0))     # tgt / query_pos / out
    mem_spec = pl.BlockSpec((1, S_m, D), lambda b, i: (b, 0, 0))     # memory / pos (resident over i)
    bias_spec = pl.BlockSpec((1, 1, S_m), lambda b, i: (b, 0, 0))
    w_spec = pl.BlockSpec((D, D), lambda b, i: (0, 0))               # whole weight, DMA'd once
    b_spec = pl.BlockSpec((1, D), lambda b, i: (0, 0))

    out_specs = [pl.BlockSpec((1, tq, D), lambda b, i: (b, i, 0))]
    out_shape = [jax.ShapeDtypeStruct((B, S_t, D), jnp.float32)]
    if need_attn:
        out_specs.append(pl.BlockSpec((1, tq, S_m), lambda b, i: (b, i, 0)))
        out_shape.append(jax.ShapeDtypeStruct((B, S_t, S_m), jnp.float32))

    results = pl.pallas_call(
        kernel,
        grid=(B, n_tq),
        in_specs=[
            tile_spec, tile_spec,            # tgt (f32), query_pos (bf16)
            mem_spec, mem_spec,              # memory (bf16), pos (bf16)
            bias_spec,                       # key-padding additive bias
            w_spec, b_spec,                  # Wq (scaled), bq (scaled)
            w_spec, b_spec,                  # Wk, bk
            w_spec, b_spec,                  # Wv, bv
            w_spec, b_spec,                  # Wo, bo
        ],
        out_specs=out_specs,
        out_shape=out_shape,
        scratch_shapes=[pltpu.VMEM((tq, D), bf16)],   # concatenated per-head context
        compiler_params=pltpu.CompilerParams(
            dimension_semantics=("parallel", "parallel")),
    )(tgt, qpos_bf, mem_bf, mpos_bf, mask_bias,
      wq_t, bq_s, wk_t, bk_r, wv_t, bv_r, wo_t, bo)

    if need_attn:
        out, attn = results
        return out, attn
    (out,) = results
    return out, None


def reference_jax(tgt, memory, key_padding_mask, pos, query_pos, params,
                  nheads, dot_or_add="dot"):
    """Pure-JAX mirror of the PyTorch module (f32 weights), for correctness."""
    B, S_t, D = tgt.shape
    C = D // nheads
    scale = C ** -0.5
    ipw, ipb = params["in_proj_weight"], params["in_proj_bias"]
    Wq, Wk, Wv = ipw[:D], ipw[D:2 * D], ipw[2 * D:]
    bq, bk, bv = ipb[:D], ipb[D:2 * D], ipb[2 * D:]
    q = (tgt + query_pos) @ Wq.T + bq
    k = (memory + pos) @ Wk.T + bk
    v = memory @ Wv.T + bv

    def split(x):
        return x.reshape(B, -1, nheads, C).transpose(0, 2, 1, 3)   # (B,H,S,C)

    qh, kh, vh = split(q), split(k), split(v)
    logits = jnp.einsum("bhqc,bhkc->bhqk", qh, kh) * scale
    if key_padding_mask is not None:
        logits = jnp.where(key_padding_mask[:, None, None, :], -1e30, logits)
    p = jax.nn.softmax(logits, axis=-1)
    ctx = jnp.einsum("bhqk,bhkc->bhqc", p, vh)
    ctx = ctx.transpose(0, 2, 1, 3).reshape(B, S_t, D)
    tgt2 = ctx @ params["out_proj_weight"].T + params["out_proj_bias"]
    attn = p.mean(axis=1)
    out = tgt + tgt2 if dot_or_add == "add" else tgt * tgt2
    return out, attn


if __name__ == "__main__":
    d_model, nheads = 128, 4          # lane-dense D; head_dim = 32
    B, S_tgt, S_mem = 2, 8, 16

    key = jax.random.PRNGKey(0)
    ks = jax.random.split(key, 8)

    params = {
        "in_proj_weight": jax.random.normal(ks[0], (3 * d_model, d_model), jnp.float32) * 0.05,
        "in_proj_bias": jax.random.normal(ks[1], (3 * d_model,), jnp.float32) * 0.05,
        "out_proj_weight": jax.random.normal(ks[2], (d_model, d_model), jnp.float32) * 0.05,
        "out_proj_bias": jax.random.normal(ks[3], (d_model,), jnp.float32) * 0.05,
    }

    tgt = jax.random.normal(ks[4], (B, S_tgt, d_model), jnp.float32)
    memory = jax.random.normal(ks[5], (B, S_mem, d_model), jnp.float32)
    query_pos = jax.random.normal(ks[6], (B, S_tgt, d_model), jnp.float32)
    pos = jax.random.normal(ks[7], (B, S_mem, d_model), jnp.float32)
    # True == padded memory (vision) position; last 3 positions are padded.
    memory_key_padding_mask = jnp.zeros((B, S_mem), dtype=bool).at[:, -3:].set(True)

    out, attn = vision_language_fusion(
        tgt, memory, params, nheads,
        memory_key_padding_mask=memory_key_padding_mask,
        pos=pos, query_pos=query_pos, dot_or_add="dot")
    jax.block_until_ready(out)
    jax.block_until_ready(attn)

    ref_out, ref_attn = reference_jax(
        tgt, memory, memory_key_padding_mask, pos, query_pos, params, nheads, "dot")
    # bf16 matmul operands / bf16 inputs + approx reciprocal => loose tolerance.
    assert jnp.allclose(out, ref_out, rtol=2e-2, atol=2e-2), \
        float(jnp.max(jnp.abs(out - ref_out)))
    assert jnp.allclose(attn, ref_attn, rtol=2e-2, atol=2e-2), \
        float(jnp.max(jnp.abs(attn - ref_attn)))

    print("KERNEL_OK")
</pallas_src>

<mosaic_0001>
module attributes {stable_mosaic.version = 11 : i64} {
  func.func @_fusion_kernel(%arg0: i32, %arg1: i32, %arg2: memref<1x8x128xf32, #tpu.memory_space<vmem>>, %arg3: memref<1x8x128xbf16, #tpu.memory_space<vmem>>, %arg4: memref<1x16x128xbf16, #tpu.memory_space<vmem>>, %arg5: memref<1x16x128xbf16, #tpu.memory_space<vmem>>, %arg6: memref<1x1x16xf32, #tpu.memory_space<vmem>>, %arg7: memref<128x128xbf16, #tpu.memory_space<vmem>>, %arg8: memref<1x128xf32, #tpu.memory_space<vmem>>, %arg9: memref<128x128xbf16, #tpu.memory_space<vmem>>, %arg10: memref<1x128xf32, #tpu.memory_space<vmem>>, %arg11: memref<128x128xbf16, #tpu.memory_space<vmem>>, %arg12: memref<1x128xf32, #tpu.memory_space<vmem>>, %arg13: memref<128x128xbf16, #tpu.memory_space<vmem>>, %arg14: memref<1x128xf32, #tpu.memory_space<vmem>>, %arg15: memref<1x8x128xf32, #tpu.memory_space<vmem>>, %arg16: memref<1x8x16xf32, #tpu.memory_space<vmem>>, %arg17: memref<8x128xbf16, #tpu.memory_space<vmem>>) attributes {dimension_semantics = [#tpu.dimension_semantics<parallel>, #tpu.dimension_semantics<parallel>], iteration_bounds = array<i64: 2, 1>, scalar_prefetch = 0 : i64, scratch_operands = 1 : i64, tpu.core_type = #tpu.core_type<tc>, window_params = [{transform_indices = @transform_0, window_bounds = array<i64: 1, 8, 128>}, {transform_indices = @transform_1, window_bounds = array<i64: 1, 8, 128>}, {transform_indices = @transform_2, window_bounds = array<i64: 1, 16, 128>}, {transform_indices = @transform_3, window_bounds = array<i64: 1, 16, 128>}, {transform_indices = @transform_4, window_bounds = array<i64: 1, 1, 16>}, {pipeline_mode = #tpu.pipeline_mode<synchronous>, transform_indices = @transform_5, window_bounds = array<i64: 128, 128>}, {pipeline_mode = #tpu.pipeline_mode<synchronous>, transform_indices = @transform_6, window_bounds = array<i64: 1, 128>}, {pipeline_mode = #tpu.pipeline_mode<synchronous>, transform_indices = @transform_7, window_bounds = array<i64: 128, 128>}, {pipeline_mode = #tpu.pipeline_mode<synchronous>, transform_indices = @transform_8, window_bounds = array<i64: 1, 128>}, {pipeline_mode = #tpu.pipeline_mode<synchronous>, transform_indices = @transform_9, window_bounds = array<i64: 128, 128>}, {pipeline_mode = #tpu.pipeline_mode<synchronous>, transform_indices = @transform_10, window_bounds = array<i64: 1, 128>}, {pipeline_mode = #tpu.pipeline_mode<synchronous>, transform_indices = @transform_11, window_bounds = array<i64: 128, 128>}, {pipeline_mode = #tpu.pipeline_mode<synchronous>, transform_indices = @transform_12, window_bounds = array<i64: 1, 128>}, {transform_indices = @transform_13, window_bounds = array<i64: 1, 8, 128>}, {transform_indices = @transform_14, window_bounds = array<i64: 1, 8, 16>}]} {
    %c0 = arith.constant 0 : index
    %c0_0 = arith.constant 0 : index
    %c0_1 = arith.constant 0 : index
    %0 = vector.load %arg2[%c0, %c0_0, %c0_1] : memref<1x8x128xf32, #tpu.memory_space<vmem>>, vector<1x8x128xf32>
    %1 = vector.shape_cast %0 : vector<1x8x128xf32> to vector<8x128xf32>
    %c0_2 = arith.constant 0 : index
    %c0_3 = arith.constant 0 : index
    %c0_4 = arith.constant 0 : index
    %2 = vector.load %arg3[%c0_2, %c0_3, %c0_4] : memref<1x8x128xbf16, #tpu.memory_space<vmem>>, vector<1x8x128xbf16>
    %3 = vector.shape_cast %2 : vector<1x8x128xbf16> to vector<8x128xbf16>
    %4 = arith.extf %3 : vector<8x128xbf16> to vector<8x128xf32>
    %5 = arith.addf %1, %4 : vector<8x128xf32>
    %6 = arith.truncf %5 : vector<8x128xf32> to vector<8x128xbf16>
    %c0_5 = arith.constant 0 : index
    %c0_6 = arith.constant 0 : index
    %c0_7 = arith.constant 0 : index
    %7 = vector.load %arg4[%c0_5, %c0_6, %c0_7] : memref<1x16x128xbf16, #tpu.memory_space<vmem>>, vector<1x16x128xbf16>
    %8 = vector.shape_cast %7 : vector<1x16x128xbf16> to vector<16x128xbf16>
    %c0_8 = arith.constant 0 : index
    %c0_9 = arith.constant 0 : index
    %c0_10 = arith.constant 0 : index
    %9 = vector.load %arg5[%c0_8, %c0_9, %c0_10] : memref<1x16x128xbf16, #tpu.memory_space<vmem>>, vector<1x16x128xbf16>
    %10 = vector.shape_cast %9 : vector<1x16x128xbf16> to vector<16x128xbf16>
    %11 = arith.addf %8, %10 : vector<16x128xbf16>
    %c0_11 = arith.constant 0 : index
    %c0_12 = arith.constant 0 : index
    %c0_13 = arith.constant 0 : index
    %12 = vector.load %arg4[%c0_11, %c0_12, %c0_13] : memref<1x16x128xbf16, #tpu.memory_space<vmem>>, vector<1x16x128xbf16>
    %13 = vector.shape_cast %12 : vector<1x16x128xbf16> to vector<16x128xbf16>
    %c0_14 = arith.constant 0 : index
    %c0_15 = arith.constant 0 : index
    %14 = vector.load %arg7[%c0_14, %c0_15] : memref<128x128xbf16, #tpu.memory_space<vmem>>, vector<128x128xbf16>
    %cst = arith.constant dense<0.000000e+00> : vector<8x128xf32>
    %15 = tpu.matmul %6, %14, %cst {dimension_numbers = #tpu.dot_dimension_numbers<[1], [0], [0], [1], [0, 0, 1, 1], [], []>} : vector<8x128xbf16>, vector<128x128xbf16>, vector<8x128xf32> -> vector<8x128xf32>
    %c0_16 = arith.constant 0 : index
    %c0_17 = arith.constant 0 : index
    %16 = vector.load %arg8[%c0_16, %c0_17] : memref<1x128xf32, #tpu.memory_space<vmem>>, vector<1x128xf32>
    %17 = vector.broadcast %16 : vector<1x128xf32> to vector<8x128xf32>
    %18 = arith.addf %15, %17 : vector<8x128xf32>
    %c0_18 = arith.constant 0 : index
    %c0_19 = arith.constant 0 : index
    %19 = vector.load %arg9[%c0_18, %c0_19] : memref<128x128xbf16, #tpu.memory_space<vmem>>, vector<128x128xbf16>
    %cst_20 = arith.constant dense<0.000000e+00> : vector<16x128xf32>
    %20 = tpu.matmul %11, %19, %cst_20 {dimension_numbers = #tpu.dot_dimension_numbers<[1], [0], [0], [1], [0, 0, 1, 1], [], []>} : vector<16x128xbf16>, vector<128x128xbf16>, vector<16x128xf32> -> vector<16x128xf32>
    %c0_21 = arith.constant 0 : index
    %c0_22 = arith.constant 0 : index
    %21 = vector.load %arg10[%c0_21, %c0_22] : memref<1x128xf32, #tpu.memory_space<vmem>>, vector<1x128xf32>
    %22 = vector.broadcast %21 : vector<1x128xf32> to vector<16x128xf32>
    %23 = arith.addf %20, %22 : vector<16x128xf32>
    %c0_23 = arith.constant 0 : index
    %c0_24 = arith.constant 0 : index
    %24 = vector.load %arg11[%c0_23, %c0_24] : memref<128x128xbf16, #tpu.memory_space<vmem>>, vector<128x128xbf16>
    %cst_25 = arith.constant dense<0.000000e+00> : vector<16x128xf32>
    %25 = tpu.matmul %13, %24, %cst_25 {dimension_numbers = #tpu.dot_dimension_numbers<[1], [0], [0], [1], [0, 0, 1, 1], [], []>} : vector<16x128xbf16>, vector<128x128xbf16>, vector<16x128xf32> -> vector<16x128xf32>
    %c0_26 = arith.constant 0 : index
    %c0_27 = arith.constant 0 : index
    %26 = vector.load %arg12[%c0_26, %c0_27] : memref<1x128xf32, #tpu.memory_space<vmem>>, vector<1x128xf32>
    %27 = vector.broadcast %26 : vector<1x128xf32> to vector<16x128xf32>
    %28 = arith.addf %25, %27 : vector<16x128xf32>
    %29 = arith.truncf %18 : vector<8x128xf32> to vector<8x128xbf16>
    %30 = arith.truncf %23 : vector<16x128xf32> to vector<16x128xbf16>
    %31 = arith.truncf %28 : vector<16x128xf32> to vector<16x128xbf16>
    %c0_28 = arith.constant 0 : index
    %c0_29 = arith.constant 0 : index
    %c0_30 = arith.constant 0 : index
    %32 = vector.load %arg6[%c0_28, %c0_29, %c0_30] : memref<1x1x16xf32, #tpu.memory_space<vmem>>, vector<1x1x16xf32>
    %33 = vector.shape_cast %32 : vector<1x1x16xf32> to vector<1x16xf32>
    %34 = vector.extract_strided_slice %29 {offsets = [0, 0], sizes = [8, 32], strides = [1, 1]} : vector<8x128xbf16> to vector<8x32xbf16>
    %35 = vector.extract_strided_slice %30 {offsets = [0, 0], sizes = [16, 32], strides = [1, 1]} : vector<16x128xbf16> to vector<16x32xbf16>
    %cst_31 = arith.constant dense<0.000000e+00> : vector<8x16xf32>
    %36 = tpu.matmul %34, %35, %cst_31 {dimension_numbers = #tpu.dot_dimension_numbers<[1], [1], [0], [0], [0, 0, 1, 0], [], []>} : vector<8x32xbf16>, vector<16x32xbf16>, vector<8x16xf32> -> vector<8x16xf32>
    %37 = vector.broadcast %33 : vector<1x16xf32> to vector<8x16xf32>
    %38 = arith.addf %36, %37 : vector<8x16xf32>
    %cst_32 = arith.constant dense<0xFF800000> : vector<8xf32>
    %39 = vector.multi_reduction <maximumf>, %38, %cst_32 [1] : vector<8x16xf32> to vector<8xf32>
    %40 = vector.shape_cast %39 : vector<8xf32> to vector<8x1xf32>
    %41 = vector.broadcast %40 : vector<8x1xf32> to vector<8x16xf32>
    %42 = arith.subf %38, %41 : vector<8x16xf32>
    %43 = math.exp %42 : vector<8x16xf32>
    %cst_33 = arith.constant dense<0.000000e+00> : vector<8xf32>
    %44 = vector.multi_reduction <add>, %43, %cst_33 [1] : vector<8x16xf32> to vector<8xf32>
    %45 = vector.shape_cast %44 : vector<8xf32> to vector<8x1xf32>
    %46 = tpu.reciprocal %45 {approx = true} : vector<8x1xf32> -> vector<8x1xf32>
    %47 = vector.broadcast %46 : vector<8x1xf32> to vector<8x16xf32>
    %48 = arith.mulf %43, %47 : vector<8x16xf32>
    %49 = arith.truncf %48 : vector<8x16xf32> to vector<8x16xbf16>
    %50 = vector.extract_strided_slice %31 {offsets = [0, 0], sizes = [16, 32], strides = [1, 1]} : vector<16x128xbf16> to vector<16x32xbf16>
    %cst_34 = arith.constant dense<0.000000e+00> : vector<8x32xf32>
    %51 = tpu.matmul %49, %50, %cst_34 {dimension_numbers = #tpu.dot_dimension_numbers<[1], [0], [0], [1], [0, 0, 1, 1], [], []>} : vector<8x16xbf16>, vector<16x32xbf16>, vector<8x32xf32> -> vector<8x32xf32>
    %52 = arith.truncf %51 : vector<8x32xf32> to vector<8x32xbf16>
    %c0_35 = arith.constant 0 : index
    %c0_36 = arith.constant 0 : index
    %53 = vector.load %arg17[%c0_35, %c0_36] : memref<8x128xbf16, #tpu.memory_space<vmem>>, vector<8x32xbf16>
    tpu.vector_store %arg17[%c0_35, %c0_36], %52 {strides = array<i32>} : memref<8x128xbf16, #tpu.memory_space<vmem>>, vector<8x32xbf16>,
    %54 = vector.extract_strided_slice %29 {offsets = [0, 32], sizes = [8, 32], strides = [1, 1]} : vector<8x128xbf16> to vector<8x32xbf16>
    %55 = vector.extract_strided_slice %30 {offsets = [0, 32], sizes = [16, 32], strides = [1, 1]} : vector<16x128xbf16> to vector<16x32xbf16>
    %cst_37 = arith.constant dense<0.000000e+00> : vector<8x16xf32>
    %56 = tpu.matmul %54, %55, %cst_37 {dimension_numbers = #tpu.dot_dimension_numbers<[1], [1], [0], [0], [0, 0, 1, 0], [], []>} : vector<8x32xbf16>, vector<16x32xbf16>, vector<8x16xf32> -> vector<8x16xf32>
    %57 = vector.broadcast %33 : vector<1x16xf32> to vector<8x16xf32>
    %58 = arith.addf %56, %57 : vector<8x16xf32>
    %cst_38 = arith.constant dense<0xFF800000> : vector<8xf32>
    %59 = vector.multi_reduction <maximumf>, %58, %cst_38 [1] : vector<8x16xf32> to vector<8xf32>
    %60 = vector.shape_cast %59 : vector<8xf32> to vector<8x1xf32>
    %61 = vector.broadcast %60 : vector<8x1xf32> to vector<8x16xf32>
    %62 = arith.subf %58, %61 : vector<8x16xf32>
    %63 = math.exp %62 : vector<8x16xf32>
    %cst_39 = arith.constant dense<0.000000e+00> : vector<8xf32>
    %64 = vector.multi_reduction <add>, %63, %cst_39 [1] : vector<8x16xf32> to vector<8xf32>
    %65 = vector.shape_cast %64 : vector<8xf32> to vector<8x1xf32>
    %66 = tpu.reciprocal %65 {approx = true} : vector<8x1xf32> -> vector<8x1xf32>
    %67 = vector.broadcast %66 : vector<8x1xf32> to vector<8x16xf32>
    %68 = arith.mulf %63, %67 : vector<8x16xf32>
    %69 = arith.truncf %68 : vector<8x16xf32> to vector<8x16xbf16>
    %70 = vector.extract_strided_slice %31 {offsets = [0, 32], sizes = [16, 32], strides = [1, 1]} : vector<16x128xbf16> to vector<16x32xbf16>
    %cst_40 = arith.constant dense<0.000000e+00> : vector<8x32xf32>
    %71 = tpu.matmul %69, %70, %cst_40 {dimension_numbers = #tpu.dot_dimension_numbers<[1], [0], [0], [1], [0, 0, 1, 1], [], []>} : vector<8x16xbf16>, vector<16x32xbf16>, vector<8x32xf32> -> vector<8x32xf32>
    %72 = arith.truncf %71 : vector<8x32xf32> to vector<8x32xbf16>
    %c0_41 = arith.constant 0 : index
    %c32 = arith.constant 32 : index
    %73 = vector.load %arg17[%c0_41, %c32] : memref<8x128xbf16, #tpu.memory_space<vmem>>, vector<8x32xbf16>
    tpu.vector_store %arg17[%c0_41, %c32], %72 {strides = array<i32>} : memref<8x128xbf16, #tpu.memory_space<vmem>>, vector<8x32xbf16>,
    %74 = arith.addf %48, %68 : vector<8x16xf32>
    %75 = vector.extract_strided_slice %29 {offsets = [0, 64], sizes = [8, 32], strides = [1, 1]} : vector<8x128xbf16> to vector<8x32xbf16>
    %76 = vector.extract_strided_slice %30 {offsets = [0, 64], sizes = [16, 32], strides = [1, 1]} : vector<16x128xbf16> to vector<16x32xbf16>
    %cst_42 = arith.constant dense<0.000000e+00> : vector<8x16xf32>
    %77 = tpu.matmul %75, %76, %cst_42 {dimension_numbers = #tpu.dot_dimension_numbers<[1], [1], [0], [0], [0, 0, 1, 0], [], []>} : vector<8x32xbf16>, vector<16x32xbf16>, vector<8x16xf32> -> vector<8x16xf32>
    %78 = vector.broadcast %33 : vector<1x16xf32> to vector<8x16xf32>
    %79 = arith.addf %77, %78 : vector<8x16xf32>
    %cst_43 = arith.constant dense<0xFF800000> : vector<8xf32>
    %80 = vector.multi_reduction <maximumf>, %79, %cst_43 [1] : vector<8x16xf32> to vector<8xf32>
    %81 = vector.shape_cast %80 : vector<8xf32> to vector<8x1xf32>
    %82 = vector.broadcast %81 : vector<8x1xf32> to vector<8x16xf32>
    %83 = arith.subf %79, %82 : vector<8x16xf32>
    %84 = math.exp %83 : vector<8x16xf32>
    %cst_44 = arith.constant dense<0.000000e+00> : vector<8xf32>
    %85 = vector.multi_reduction <add>, %84, %cst_44 [1] : vector<8x16xf32> to vector<8xf32>
    %86 = vector.shape_cast %85 : vector<8xf32> to vector<8x1xf32>
    %87 = tpu.reciprocal %86 {approx = true} : vector<8x1xf32> -> vector<8x1xf32>
    %88 = vector.broadcast %87 : vector<8x1xf32> to vector<8x16xf32>
    %89 = arith.mulf %84, %88 : vector<8x16xf32>
    %90 = arith.truncf %89 : vector<8x16xf32> to vector<8x16xbf16>
    %91 = vector.extract_strided_slice %31 {offsets = [0, 64], sizes = [16, 32], strides = [1, 1]} : vector<16x128xbf16> to vector<16x32xbf16>
    %cst_45 = arith.constant dense<0.000000e+00> : vector<8x32xf32>
    %92 = tpu.matmul %90, %91, %cst_45 {dimension_numbers = #tpu.dot_dimension_numbers<[1], [0], [0], [1], [0, 0, 1, 1], [], []>} : vector<8x16xbf16>, vector<16x32xbf16>, vector<8x32xf32> -> vector<8x32xf32>
    %93 = arith.truncf %92 : vector<8x32xf32> to vector<8x32xbf16>
    %c0_46 = arith.constant 0 : index
    %c64 = arith.constant 64 : index
    %94 = vector.load %arg17[%c0_46, %c64] : memref<8x128xbf16, #tpu.memory_space<vmem>>, vector<8x32xbf16>
    tpu.vector_store %arg17[%c0_46, %c64], %93 {strides = array<i32>} : memref<8x128xbf16, #tpu.memory_space<vmem>>, vector<8x32xbf16>,
    %95 = arith.addf %74, %89 : vector<8x16xf32>
    %96 = vector.extract_strided_slice %29 {offsets = [0, 96], sizes = [8, 32], strides = [1, 1]} : vector<8x128xbf16> to vector<8x32xbf16>
    %97 = vector.extract_strided_slice %30 {offsets = [0, 96], sizes = [16, 32], strides = [1, 1]} : vector<16x128xbf16> to vector<16x32xbf16>
    %cst_47 = arith.constant dense<0.000000e+00> : vector<8x16xf32>
    %98 = tpu.matmul %96, %97, %cst_47 {dimension_numbers = #tpu.dot_dimension_numbers<[1], [1], [0], [0], [0, 0, 1, 0], [], []>} : vector<8x32xbf16>, vector<16x32xbf16>, vector<8x16xf32> -> vector<8x16xf32>
    %99 = vector.broadcast %33 : vector<1x16xf32> to vector<8x16xf32>
    %100 = arith.addf %98, %99 : vector<8x16xf32>
    %cst_48 = arith.constant dense<0xFF800000> : vector<8xf32>
    %101 = vector.multi_reduction <maximumf>, %100, %cst_48 [1] : vector<8x16xf32> to vector<8xf32>
    %102 = vector.shape_cast %101 : vector<8xf32> to vector<8x1xf32>
    %103 = vector.broadcast %102 : vector<8x1xf32> to vector<8x16xf32>
    %104 = arith.subf %100, %103 : vector<8x16xf32>
    %105 = math.exp %104 : vector<8x16xf32>
    %cst_49 = arith.constant dense<0.000000e+00> : vector<8xf32>
    %106 = vector.multi_reduction <add>, %105, %cst_49 [1] : vector<8x16xf32> to vector<8xf32>
    %107 = vector.shape_cast %106 : vector<8xf32> to vector<8x1xf32>
    %108 = tpu.reciprocal %107 {approx = true} : vector<8x1xf32> -> vector<8x1xf32>
    %109 = vector.broadcast %108 : vector<8x1xf32> to vector<8x16xf32>
    %110 = arith.mulf %105, %109 : vector<8x16xf32>
    %111 = arith.truncf %110 : vector<8x16xf32> to vector<8x16xbf16>
    %112 = vector.extract_strided_slice %31 {offsets = [0, 96], sizes = [16, 32], strides = [1, 1]} : vector<16x128xbf16> to vector<16x32xbf16>
    %cst_50 = arith.constant dense<0.000000e+00> : vector<8x32xf32>
    %113 = tpu.matmul %111, %112, %cst_50 {dimension_numbers = #tpu.dot_dimension_numbers<[1], [0], [0], [1], [0, 0, 1, 1], [], []>} : vector<8x16xbf16>, vector<16x32xbf16>, vector<8x32xf32> -> vector<8x32xf32>
    %114 = arith.truncf %113 : vector<8x32xf32> to vector<8x32xbf16>
    %c0_51 = arith.constant 0 : index
    %c96 = arith.constant 96 : index
    %115 = vector.load %arg17[%c0_51, %c96] : memref<8x128xbf16, #tpu.memory_space<vmem>>, vector<8x32xbf16>
    tpu.vector_store %arg17[%c0_51, %c96], %114 {strides = array<i32>} : memref<8x128xbf16, #tpu.memory_space<vmem>>, vector<8x32xbf16>,
    %116 = arith.addf %95, %110 : vector<8x16xf32>
    %c0_52 = arith.constant 0 : index
    %c0_53 = arith.constant 0 : index
    %117 = vector.load %arg17[%c0_52, %c0_53] : memref<8x128xbf16, #tpu.memory_space<vmem>>, vector<8x128xbf16>
    %c0_54 = arith.constant 0 : index
    %c0_55 = arith.constant 0 : index
    %118 = vector.load %arg13[%c0_54, %c0_55] : memref<128x128xbf16, #tpu.memory_space<vmem>>, vector<128x128xbf16>
    %cst_56 = arith.constant dense<0.000000e+00> : vector<8x128xf32>
    %119 = tpu.matmul %117, %118, %cst_56 {dimension_numbers = #tpu.dot_dimension_numbers<[1], [0], [0], [1], [0, 0, 1, 1], [], []>} : vector<8x128xbf16>, vector<128x128xbf16>, vector<8x128xf32> -> vector<8x128xf32>
    %c0_57 = arith.constant 0 : index
    %c0_58 = arith.constant 0 : index
    %120 = vector.load %arg14[%c0_57, %c0_58] : memref<1x128xf32, #tpu.memory_space<vmem>>, vector<1x128xf32>
    %121 = vector.broadcast %120 : vector<1x128xf32> to vector<8x128xf32>
    %122 = arith.addf %119, %121 : vector<8x128xf32>
    %c0_59 = arith.constant 0 : index
    %c0_60 = arith.constant 0 : index
    %c0_61 = arith.constant 0 : index
    %123 = vector.load %arg2[%c0_59, %c0_60, %c0_61] : memref<1x8x128xf32, #tpu.memory_space<vmem>>, vector<1x8x128xf32>
    %124 = vector.shape_cast %123 : vector<1x8x128xf32> to vector<8x128xf32>
    %125 = arith.mulf %124, %122 : vector<8x128xf32>
    %c0_62 = arith.constant 0 : index
    %c0_63 = arith.constant 0 : index
    %c0_64 = arith.constant 0 : index
    %126 = vector.load %arg15[%c0_62, %c0_63, %c0_64] : memref<1x8x128xf32, #tpu.memory_space<vmem>>, vector<1x8x128xf32>
    %127 = vector.shape_cast %126 : vector<1x8x128xf32> to vector<8x128xf32>
    %128 = vector.shape_cast %125 : vector<8x128xf32> to vector<1x8x128xf32>
    tpu.vector_store %arg15[%c0_62, %c0_63, %c0_64], %128 {strides = array<i32>} : memref<1x8x128xf32, #tpu.memory_space<vmem>>, vector<1x8x128xf32>,
    %cst_65 = arith.constant 2.500000e-01 : f32
    %129 = vector.broadcast %cst_65 : f32 to vector<8x16xf32>
    %130 = arith.mulf %116, %129 : vector<8x16xf32>
    %c0_66 = arith.constant 0 : index
    %c0_67 = arith.constant 0 : index
    %c0_68 = arith.constant 0 : index
    %131 = vector.load %arg16[%c0_66, %c0_67, %c0_68] : memref<1x8x16xf32, #tpu.memory_space<vmem>>, vector<1x8x16xf32>
    %132 = vector.shape_cast %131 : vector<1x8x16xf32> to vector<8x16xf32>
    %133 = vector.shape_cast %130 : vector<8x16xf32> to vector<1x8x16xf32>
    tpu.vector_store %arg16[%c0_66, %c0_67, %c0_68], %133 {strides = array<i32>} : memref<1x8x16xf32, #tpu.memory_space<vmem>>, vector<1x8x16xf32>,
    return
  }
  func.func @transform_0(%arg0: i32, %arg1: i32) -> (i32, i32, i32) {
    %c0_i32 = arith.constant 0 : i32
    %c0_i32_0 = arith.constant 0 : i32
    return %arg0, %arg1, %c0_i32 : i32, i32, i32
  }
  func.func @transform_1(%arg0: i32, %arg1: i32) -> (i32, i32, i32) {
    %c0_i32 = arith.constant 0 : i32
    %c0_i32_0 = arith.constant 0 : i32
    return %arg0, %arg1, %c0_i32 : i32, i32, i32
  }
  func.func @transform_2(%arg0: i32, %arg1: i32) -> (i32, i32, i32) {
    %c0_i32 = arith.constant 0 : i32
    %c0_i32_0 = arith.constant 0 : i32
    %c0_i32_1 = arith.constant 0 : i32
    return %arg0, %c0_i32, %c0_i32_0 : i32, i32, i32
  }
  func.func @transform_3(%arg0: i32, %arg1: i32) -> (i32, i32, i32) {
    %c0_i32 = arith.constant 0 : i32
    %c0_i32_0 = arith.constant 0 : i32
    %c0_i32_1 = arith.constant 0 : i32
    return %arg0, %c0_i32, %c0_i32_0 : i32, i32, i32
  }
  func.func @transform_4(%arg0: i32, %arg1: i32) -> (i32, i32, i32) {
    %c0_i32 = arith.constant 0 : i32
    %c0_i32_0 = arith.constant 0 : i32
    %c0_i32_1 = arith.constant 0 : i32
    return %arg0, %c0_i32, %c0_i32_0 : i32, i32, i32
  }
  func.func @transform_5(%arg0: i32, %arg1: i32) -> (i32, i32) {
    %c0_i32 = arith.constant 0 : i32
    %c0_i32_0 = arith.constant 0 : i32
    %c0_i32_1 = arith.constant 0 : i32
    return %c0_i32, %c0_i32_0 : i32, i32
  }
  func.func @transform_6(%arg0: i32, %arg1: i32) -> (i32, i32) {
    %c0_i32 = arith.constant 0 : i32
    %c0_i32_0 = arith.constant 0 : i32
    %c0_i32_1 = arith.constant 0 : i32
    return %c0_i32, %c0_i32_0 : i32, i32
  }
  func.func @transform_7(%arg0: i32, %arg1: i32) -> (i32, i32) {
    %c0_i32 = arith.constant 0 : i32
    %c0_i32_0 = arith.constant 0 : i32
    %c0_i32_1 = arith.constant 0 : i32
    return %c0_i32, %c0_i32_0 : i32, i32
  }
  func.func @transform_8(%arg0: i32, %arg1: i32) -> (i32, i32) {
    %c0_i32 = arith.constant 0 : i32
    %c0_i32_0 = arith.constant 0 : i32
    %c0_i32_1 = arith.constant 0 : i32
    return %c0_i32, %c0_i32_0 : i32, i32
  }
  func.func @transform_9(%arg0: i32, %arg1: i32) -> (i32, i32) {
    %c0_i32 = arith.constant 0 : i32
    %c0_i32_0 = arith.constant 0 : i32
    %c0_i32_1 = arith.constant 0 : i32
    return %c0_i32, %c0_i32_0 : i32, i32
  }
  func.func @transform_10(%arg0: i32, %arg1: i32) -> (i32, i32) {
    %c0_i32 = arith.constant 0 : i32
    %c0_i32_0 = arith.constant 0 : i32
    %c0_i32_1 = arith.constant 0 : i32
    return %c0_i32, %c0_i32_0 : i32, i32
  }
  func.func @transform_11(%arg0: i32, %arg1: i32) -> (i32, i32) {
    %c0_i32 = arith.constant 0 : i32
    %c0_i32_0 = arith.constant 0 : i32
    %c0_i32_1 = arith.constant 0 : i32
    return %c0_i32, %c0_i32_0 : i32, i32
  }
  func.func @transform_12(%arg0: i32, %arg1: i32) -> (i32, i32) {
    %c0_i32 = arith.constant 0 : i32
    %c0_i32_0 = arith.constant 0 : i32
    %c0_i32_1 = arith.constant 0 : i32
    return %c0_i32, %c0_i32_0 : i32, i32
  }
  func.func @transform_13(%arg0: i32, %arg1: i32) -> (i32, i32, i32) {
    %c0_i32 = arith.constant 0 : i32
    %c0_i32_0 = arith.constant 0 : i32
    return %arg0, %arg1, %c0_i32 : i32, i32, i32
  }
  func.func @transform_14(%arg0: i32, %arg1: i32) -> (i32, i32, i32) {
    %c0_i32 = arith.constant 0 : i32
    %c0_i32_0 = arith.constant 0 : i32
    return %arg0, %arg1, %c0_i32 : i32, i32, i32
  }
}

</mosaic_0001>

<bundles_post_ra>
// kernel: tpu_custom_call.1
= control target key start
LH: loop header
LB: loop body
LE: loop exit
PB: predicated region body
PF: predicated region fallthrough
CT: control target
= control target key end

     0   :  { %s2759_s0 = inlined_call_operand.hbm [shape: f32[2,8,128], index: 0, kind: input, shape index: {}]   ;;  %s2760_s1 = inlined_call_operand.hbm [shape: bf16[2,8,128], index: 1, kind: input, shape index: {}]   ;;  %s2761_s2 = inlined_call_operand.hbm [shape: bf16[2,16,128], index: 2, kind: input, shape index: {}]   ;;  %s2762_s3 = inlined_call_operand.hbm [shape: bf16[2,16,128], index: 3, kind: input, shape index: {}]   ;;  %s2763_s4 = inlined_call_operand.vmem [shape: f32[2,1,16], index: 4, kind: input, shape index: {}]   ;;  %s2764_s5 = inlined_call_operand.hbm [shape: bf16[128,128], index: 5, kind: input, shape index: {}]   ;;  %s2765_s6 = inlined_call_operand.vmem [shape: f32[1,128], index: 6, kind: input, shape index: {}]   ;;  %s2766_s7 = inlined_call_operand.hbm [shape: bf16[128,128], index: 7, kind: input, shape index: {}]   ;;  %s2767_s8 = inlined_call_operand.vmem [shape: f32[1,128], index: 8, kind: input, shape index: {}]   ;;  %s2768_s9 = inlined_call_operand.hbm [shape: bf16[128,128], index: 9, kind: input, shape index: {}]   ;;  %s2769_s10 = inlined_call_operand.vmem [shape: f32[1,128], index: 10, kind: input, shape index: {}]   ;;  %s2770_s11 = inlined_call_operand.hbm [shape: bf16[128,128], index: 11, kind: input, shape index: {}]   ;;  %s2771_s12 = inlined_call_operand.vmem [shape: f32[1,128], index: 12, kind: input, shape index: {}]   ;;  %s2772_s13 = inlined_call_operand.hbm [shape: f32[2,8,128], index: 13, kind: output, shape index: {0}]   ;;  %s2773_s14 = inlined_call_operand.hbm [shape: f32[2,8,16], index: 14, kind: output, shape index: {1}]  }
   0x1   :  { %2789 = sst [smem:[#allocation36_spill]] %s2759_s0 }
   0x2   :  { %2790 = sst [smem:[#allocation37_spill]] %s2760_s1 }
   0x3   :  { %2791 = sst [smem:[#allocation38_spill]] %s2763_s4 }
   0x4   :  { %2792 = sst [smem:[#allocation39_spill]] %s2764_s5 }
   0x5   :  { %2793 = sst [smem:[#allocation40_spill]] %s2766_s7 }
   0x6   :  { %2794 = sst [smem:[#allocation41_spill]] %s2768_s9 }
   0x7   :  { %2795 = sst [smem:[#allocation42_spill]] %s2769_s10 }
   0x8   :  { %2796 = sst [smem:[#allocation43_spill]] %s2770_s11 }
   0x9   :  { %2797 = sst [smem:[#allocation44_spill]] %s2771_s12 }
   0xa   :  { %2798 = sst [smem:[#allocation45_spill]] %s2772_s13 }
   0xb   :  { %2799 = sst [smem:[#allocation46_spill]] %s2773_s14 }
   0xc   :  { %20 = vsyncpa [#allocation4], 0 }
   0xd   :  { %22 = vsyncpa [#allocation4 + $0x1], 0 }
   0xe   :  { %23 = vsyncpa [#allocation7], 0 }
   0xf   :  { %25 = vsyncpa [#allocation7 + $0x1], 0 }
  0x10   :  { %26 = vsyncpa [#allocation10], 0 }
  0x11   :  { %28 = vsyncpa [#allocation10 + $0x1], 0 }
  0x12   :  { %29 = vsyncpa [#allocation13], 0 }
  0x13   :  { %30 = vsyncpa [#allocation16], 0 }
  0x14   :  { %31 = vsyncpa [#allocation5], 0 }
  0x15   :  { %33 = vsyncpa [#allocation5 + $0x1], 0 }
  0x16   :  { %34 = vsyncpa [#allocation19], 0 }
  0x17   :  { %36 = vsyncpa [#allocation19 + $0x1], 0  ;;  %s2422_s29 = smov 0   ;;  %s2424_s30 = smov 0  }
  0x18   :  { %s2426_s15 = smov 0   ;;  %s2428_s16 = smov 0  }
  0x19   :  { %s2430_s17 = smov 0   ;;  %s2432_s18 = smov 0  }
  0x1a LB: > { %2800 = sst [smem:[#allocation28_spill]] %s2316_s29  ;;  %s2453_s19 = sadd.s32 4294967295, %s2336_s18   ;;  %s2336_s18 = sphi %s2432_s18, %s42_s18   ;;  %s2332_s17 = sphi %s2430_s17, %s2840_s17   ;;  %s2328_s16 = sphi %s2428_s16, %s2836_s16   ;;  %s2324_s15 = sphi %s2426_s15, %s2835_s15   ;;  %s2320_s30 = sphi %s2424_s30, %s2839_s30   ;;  %s2316_s29 = sphi %s2422_s29, %s2838_s29  }
  0x1b   : > { %2801 = sst [smem:[#allocation29_spill]] %s2324_s15  ;;  %p1601_p0 = scmp.ge.s32.totalorder %s2336_s18, 1 }
  0x1c   : > { %2802 = sst [smem:[#allocation30_spill]] %s2328_s16  ;;  %p77_p1 = scmp.eq.s32.totalorder %s2453_s19, 0 }
  0x1d   : > { %2803 = sst [smem:[#allocation31_spill]] %s2332_s17  ;;  %p417_p2 = scmp.lt.s32.totalorder %s2336_s18, 3 }
  0x1e   : > { %s2804_s5 = sld [smem:[#allocation39_spill]]  ;;  %s2338_s24 = smov [#allocation11]  }
  0x1f   : > { %p2461_p3 = pnand %p1601_p0, %p417_p2  ;;  %s430_s25 = sshll.u32 %s2338_s24, 4  ;;  %s431_s25 = int_to_ptr.vmem [resolvable:$true] %s430_s25 }
  0x20   : > { %s2807_s7 = sld [smem:[#allocation40_spill]]  ;;  %s2775_s21 = smov 64  }
  0x21   : > { %p1841_p4 = pneg %p2461_p3  ;;  %s2777_s24 = smov 4  }
  0x22   : > { %s1600_s27 = sadd.s32 4294967294, %s2336_s18   ;;  %s54_s28 = sadd.s32 1, %s2332_s17 }
  0x23   : > { %p2469_p5 = pnand %p1841_p4, %p77_p1  ;;  %p56_p7 = scmp.ge.s32.totalorder %s54_s28, 2 }
  0x24   : > { %s428_s22 = sshll.u32 %s2804_s5, 4  ;;  %s2341_s5 = smov [#allocation12]   ;;  %s429_s22 = int_to_ptr.hbm [resolvable:$true] %s428_s22 }
  0x25   : > { %1844 = dma.hbm_to_vmem [thread:$0]  (!%p2469_p5), %s429_s22, 1024, %s431_s25, [#allocation10], %s2775_s21, %s2775_s21, %s2777_s24  }
  0x26   : > { %s445_s20 = sshll.u32 %s2807_s7, 4  ;;  %s447_s13 = sshll.u32 %s2341_s5, 4  ;;  %s446_s20 = int_to_ptr.hbm [resolvable:$true] %s445_s20  ;;  %s448_s13 = int_to_ptr.vmem [resolvable:$true] %s447_s13 }
  0x27   : > { %1847 = dma.hbm_to_vmem [thread:$0]  (!%p2469_p5), %s446_s20, 1024, %s448_s13, [#allocation13], %s2775_s21, %s2775_s21, %s2777_s24  }
  0x28   : > { %s63_s7 = sadd.s32 1, %s2324_s15  ;;  %p70_p8 = scmp.ne.s32.totalorder %s2324_s15, %s2320_s30 }
  0x29   : > { %p71_p9 = scmp.eq.s32.totalorder %s2336_s18, 0  ;;  %s2842_s28 = smov (%p56_p7, %s54_s28), 0 }
  0x2a   : > { %2808 = sst [smem:[#allocation32_spill]] %s2842_s28  ;;  %p76_p11 = scmp.ne.s32.totalorder %s2320_s30, %s2316_s29 }
  0x2b   : > { %p2495_p10 = por %p71_p9, %p70_p8  ;;  %s58_s13 = ssub.s32 %s2332_s17, %s2842_s28 }
  0x2c   : > { %p376_p12 = scmp.eq.s32.totalorder %s2453_s19, 1  ;;  %p61_p13 = scmp.eq.s32.totalorder %s58_s13, 0 }
  0x2d   : > { %p2506_p0 = por %p77_p1, %p76_p11  ;;  %p382_p4 = scmp.eq.s32.totalorder %s1600_s27, 1 }
  0x2e   : > { %p2510_p2 = por %p376_p12, %p70_p8  ;;  %p1878_p9 = scmp.lt.s32.totalorder %s2336_s18, 2 }
  0x2f   : > { %s2515_s20 = scalar_select %p61_p13, %s2324_s15, %s63_s7  }
  0x30   : > { %s2811_s25 = scalar_select %p2510_p2, 1, 0 }
  0x31   : > { %2813 = sst [smem:[#allocation34_spill]] %s2515_s20  ;;  %p2517_p7 = por %p382_p4, %p76_p11 }
  0x32   : > { %2812 = sst [smem:[#allocation33_spill]] %s2811_s25  ;;  %s2523_s24 = sand.u32 1, %s2324_s15  }
  0x33   : > { %s2814_s21 = scalar_select %p2517_p7, 1, 0 }
  0x34   : > { %s2786_s13 = sand.u32 1, %s2336_s18   ;;  %p2528_p6 = pnand %p1878_p9, %p2495_p10 }
  0x35   : > { %2815 = sst [smem:[#allocation35_spill]] %s2814_s21  ;;  %s1609_s29 = sshll.u32 %s2523_s24, 2 }
  0x36   : > { %s1610_s27 = sshll.u32 %s2332_s17, 2  ;;  %s2817_s1 = sld [smem:[#allocation37_spill]] }
  0x37   : > { %s522_s14 = scalar_lea.vmem [#allocation6], %s1609_s29  ;;  %s2539_s5 = scalar_lea.sflag [#allocation7], %s2786_s13 }
  0x38   : > { %s531_s21 = sshll.u32 %s522_s14, 4  ;;  %s2818_s9 = sld [smem:[#allocation41_spill]]  ;;  %s532_s21 = int_to_ptr.vmem [resolvable:$true] %s531_s21 }
  0x39   : > { %s2342_s20 = smov [#allocation14]   ;;  %s2819_s11 = sld [smem:[#allocation43_spill]] }
  0x3a   : > { %s464_s29 = sshll.u32 %s2342_s20, 4  ;;  %s2820_s7 = smov 4   ;;  %s465_s29 = int_to_ptr.vmem [resolvable:$true] %s464_s29 }
  0x3b   : > { %s2821_s13 = smov 64   ;;  %s1607_s10 = sshll.u32 %s2523_s24, 3 }
  0x3c   : > { %s527_s12 = scalar_lea.hbm %s2817_s1, %s1610_s27  ;;  %s1608_s15 = sshll.u32 %s2332_s17, 3 }
  0x3d   : > { %s529_s25 = sshll.u32 %s527_s12, 4  ;;  %s2822_s0 = sld [smem:[#allocation36_spill]]  ;;  %s530_s25 = int_to_ptr.hbm [resolvable:$true] %s529_s25 }
  0x3e   : > { %1860 = dma.hbm_to_vmem [thread:$0]  (!%p2528_p6), %s530_s25, 64, %s532_s21, %s2539_s5  }
  0x3f   : > { %s462_s4 = sshll.u32 %s2818_s9, 4  ;;  %s479_s27 = sshll.u32 %s2819_s11, 4  ;;  %s463_s4 = int_to_ptr.hbm [resolvable:$true] %s462_s4  ;;  %s480_s27 = int_to_ptr.hbm [resolvable:$true] %s479_s27 }
  0x40   : > { %1850 = dma.hbm_to_vmem [thread:$0]  (!%p2469_p5), %s463_s4, 1024, %s465_s29, [#allocation13], %s2821_s13, %s2821_s13, %s2820_s7  }
  0x41   : > { %s2343_s21 = smov [#allocation15]   ;;  %s502_s1 = scalar_lea.vmem [#allocation3], %s1607_s10 }
  0x42   : > { %s481_s25 = sshll.u32 %s2343_s21, 4  ;;  %s511_s9 = sshll.u32 %s502_s1, 4  ;;  %s482_s25 = int_to_ptr.vmem [resolvable:$true] %s481_s25  ;;  %s512_s9 = int_to_ptr.vmem [resolvable:$true] %s511_s9 }
  0x43   : > { %1853 = dma.hbm_to_vmem [thread:$0]  (!%p2469_p5), %s480_s27, 1024, %s482_s25, [#allocation16], %s2821_s13, %s2821_s13, %s2820_s7  }
  0x44   : > { %s507_s14 = scalar_lea.hbm %s2822_s0, %s1608_s15  ;;  %s499_s4 = scalar_lea.sflag [#allocation4], %s2523_s24 }
  0x45   : > { %s509_s11 = sshll.u32 %s507_s14, 4  ;;  %s547_s27 = scalar_lea.hbm %s2761_s2, %s1608_s15  ;;  %s510_s11 = int_to_ptr.hbm [resolvable:$true] %s509_s11 }
  0x46   : > { %1857 = dma.hbm_to_vmem [thread:$0]  (!%p2528_p6), %s510_s11, 128, %s512_s9, %s499_s4  }
  0x47   : > { %s542_s21 = scalar_lea.vmem [#allocation8], %s1607_s10  ;;  %s548_s20 = sshll.u32 %s547_s27, 4  ;;  %s549_s20 = int_to_ptr.hbm [resolvable:$true] %s548_s20 }
  0x48   : > { %s550_s25 = sshll.u32 %s542_s21, 4  ;;  %s569_s14 = scalar_lea.hbm %s2762_s3, %s1608_s15  ;;  %s551_s25 = int_to_ptr.vmem [resolvable:$true] %s550_s25 }
  0x49   : > { %s564_s0 = scalar_lea.vmem [#allocation9], %s1607_s10  ;;  %s570_s16 = sshll.u32 %s569_s14, 4  ;;  %s571_s16 = int_to_ptr.hbm [resolvable:$true] %s570_s16 }
  0x4a   : > { %s572_s17 = sshll.u32 %s564_s0, 4  ;;  %s2823_s9 = sand.u32 1, %s2336_s18   ;;  %s573_s17 = int_to_ptr.vmem [resolvable:$true] %s572_s17 }
  0x4b   : > { %1863 = dma.hbm_to_vmem [thread:$0]  (!%p2528_p6), %s549_s20, 128, %s551_s25, %s2539_s5, %s2821_s13, %s2821_s13, %s2820_s7  }
  0x4c   : > { %s561_s11 = scalar_lea.sflag [#allocation10], %s2823_s9  ;;  %590 = sbr.rel (%p2461_p3) target bundleno = 1490 (0x5d2), region = 72 }
  0x4d   : > { %1866 = dma.hbm_to_vmem [thread:$0]  (!%p2528_p6), %s571_s16, 128, %s573_s17, %s561_s11, %s2821_s13, %s2821_s13, %s2820_s7  }
  0x4e   : > { %s2590_s0 = sand.u32 (!%p2461_p3), 1, %s2320_s30  }
  0x4f   : > { %s2593_s24 = sshll.u32 (!%p2461_p3), %s2590_s0, 3  ;;  %s593_s5 = scalar_lea.sflag (!%p2461_p3), [#allocation4], %s2590_s0 }
  0x50   : > { %s596_s10 = scalar_lea.vmem (!%p2461_p3), [#allocation3], %s2593_s24 }
  0x51   : > { %2283 = dma.done.wait (%p2506_p0), %s593_s5, 128  }
  0x52   : > { %2285 = vsyncadd (%p2506_p0), %s593_s5, 4294967168  ;;  %s602_s16 = sand.u32 1, %s2453_s19   ;;  %s1619_s17 = sshll.u32 %s2590_s0, 2 }
  0x53   : > { %s603_s23 = scalar_lea.sflag [#allocation7], %s602_s16  ;;  %s2603_s28 = scalar_lea.vmem [#allocation6], %s1619_s17 }
  0x54   : > { %2287 = dma.done.wait (%p2506_p0), %s603_s23, 192  }
  0x55   : > { %2289 = vsyncadd (%p2506_p0), %s603_s23, 4294967104  ;;  %s616_s13 = scalar_lea.vmem [#allocation8], %s2593_s24  ;;  %s623_s7 = scalar_lea.sflag [#allocation10], %s602_s16 }
  0x56   : > { %s626_s15 = scalar_lea.vmem [#allocation9], %s2593_s24 }
  0x57   : > { %2291 = dma.done.wait (%p2506_p0), %s623_s7, 128  }
  0x58   : > { %2293 = vsyncadd (%p2506_p0), %s623_s7, 4294967168 }
  0x59   : > { %2295 = dma.done.wait (%p77_p1), [#allocation10], 1024  }
  0x5a   : > { %2297 = vsyncadd (%p77_p1), [#allocation10], 4294966272 }
  0x5b   : > { %2299 = dma.done.wait (%p77_p1), [#allocation13], 2048  }
  0x5c   : > { %2301 = vsyncadd (%p77_p1), [#allocation13], 4294965248 }
  0x5d   : > { %2303 = dma.done.wait (%p77_p1), [#allocation16], 1024  }
  0x5e   : > { %2305 = vsyncadd (%p77_p1), [#allocation16], 4294966272  ;;  %v1792_v0 = vld [vmem:[#allocation12 + $0x38] sm:$0xff]  ;;  %v1791_v2 = vld [vmem:[#allocation12 + $0x30] sm:$0xff]  ;;  %s2824_s29 = sld [smem:[#allocation30_spill]]  ;;  %vm1000_vm0 = vcmask 261120  }
  0x5f   : > { %v1784_v1 = vld [vmem:[#allocation11 + $0x38] sm:$0xff]  ;;  %884 = vmatpush.bf16.msra.mxu1 %v1792_v0  ;;  %v1783_v3 = vld [vmem:[#allocation11 + $0x30] sm:$0xff]  ;;  %v1790_v4 = vld [vmem:[#allocation12 + $0x28] sm:$0xff]  ;;  %s2344_s27 = smov 64   ;;  %s2345_s21 = smov 96   ;;  %vm1020_vm1 = vcmask 130048  }
  0x60   : > { %803 = vmatpush.bf16.msra.mxu0 %v1784_v1  ;;  %v1800_v5 = vld [vmem:[#allocation14 + $0x38] sm:$0xff]  ;;  %v1782_v6 = vld [vmem:[#allocation11 + $0x28] sm:$0xff]  ;;  %v1799_v7 = vld [vmem:[#allocation14 + $0x30] sm:$0xff]  ;;  %s2825_s12 = sld [smem:[#allocation38_spill]]  ;;  %s2346_s9 = smov 32   ;;  %vm1056_vm2 = vcmask 257024  }
  0x61   : > { %972 = vmatpush.bf16.msra.mxu2 %v1800_v5  ;;  %v1789_v8 = vld [vmem:[#allocation12 + $0x20] sm:$0xff]  ;;  %v1798_v10 = vld [vmem:[#allocation14 + $0x28] sm:$0xff]  ;;  %v1788_v11 = vld [vmem:[#allocation12 + $0x18] sm:$0xff]  ;;  %s714_s16 = scalar_lea.vmem [#allocation18], %s2593_s24  ;;  %vm1120_vm3 = vcmask 519424   ;;  %vm1182_vm4 = vcmask 781824  }
  0x62   : > { %v1781_v9 = vld [vmem:[#allocation11 + $0x20] sm:$0xff]  ;;  %v1780_v12 = vld [vmem:[#allocation11 + $0x18] sm:$0xff]  ;;  %v1787_v14 = vld [vmem:[#allocation12 + $0x10] sm:$0xff]  ;;  %vm1244_vm5 = vcmask 1044224   ;;  %s2828_s7 = sld [smem:[#allocation46_spill]]  ;;  %s1368_s19 = sshll.u32 %s714_s16, 4  ;;  %s1369_s19 = int_to_ptr.vmem [resolvable:$true] %s1368_s19 }
  0x63   : > { %885 = vmatpush.bf16.msra.mxu1 %v1791_v2  ;;  %v1797_v13 = vld [vmem:[#allocation14 + $0x20] sm:$0xff]  ;;  %v1810_v16 = vld [vmem:[%s626_s15] sm:$0xff]   ;;  %v1786_v24 = vld [vmem:[#allocation12 + $0x8] sm:$0xff]  ;;  %s1340_s4 = scalar_lea.sflag [#allocation19], %s2590_s0 }
  0x64   : > { %804 = vmatpush.bf16.msra.mxu0 %v1783_v3  ;;  %v724_v15 = vld [vmem:[%s616_s13] sm:$0xff]   ;;  %v1779_v17 = vld [vmem:[#allocation11 + $0x10] sm:$0xff]  ;;  %v720_v18 = vld [vmem:[%s2603_s28] sm:$0xf]  ;;  %v1811_v20 = vunpack.c.l.bf16 %v1810_v16  ;;  %v1812_v21 = vunpack.c.h.bf16 %v1810_v16  ;;  %p715_p1 = scmp.lt.s32.totalorder %s2824_s29, 1  ;;  %s1770_s23 = sshll.u32 %s2824_s29, 3 }
  0x65   : > { %973 = vmatpush.bf16.msra.mxu2 %v1799_v7  ;;  %v1796_v19 = vld [vmem:[#allocation14 + $0x18] sm:$0xff]  ;;  %v728_v22 = vunpack.c.l.bf16 %v724_v15  ;;  %v729_v23 = vunpack.c.h.bf16 %v724_v15  ;;  %v721_v25 = vunpack.c.l.bf16 %v720_v18  ;;  %v1778_v26 = vld [vmem:[#allocation11 + $0x8] sm:$0xff]  ;;  %v1795_v28 = vld [vmem:[#allocation14 + $0x10] sm:$0xff] }
  0x66   : > { %v2634_v27 = vld [vmem:[%s596_s10] sm:$0xff]  ;;  %v1785_v31 = vld [vmem:[#allocation12] sm:$0xff]  ;;  %s716_s25 = scalar_select %p715_p1, %s2824_s29, 1 }
  0x67   : > { %886 = vmatpush.bf16.msra.mxu1 %v1790_v4  ;;  %v732_v29 = vadd.f32 %v1811_v20, %v728_v22  ;;  %v733_v30 = vadd.f32 %v1812_v21, %v729_v23  ;;  %v722_v32 = vadd.f32 %v721_v25, %v2634_v27  ;;  %v1777_v33 = vld [vmem:[#allocation11] sm:$0xff]  ;;  %v1794_v34 = vld [vmem:[#allocation14 + $0x8] sm:$0xff]  ;;  %s2826_s10 = sld [smem:[#allocation42_spill]] }
  0x68   : > { %805 = vmatpush.bf16.msra.mxu0 %v1782_v6  ;;  %v1793_v37 = vld [vmem:[#allocation14] sm:$0xff]  ;;  %s717_s14 = scalar_lea.vmem %s2825_s12, %s716_s25  ;;  %s1366_s15 = scalar_lea.hbm %s2828_s7, %s1770_s23 }
  0x69   : > { %974 = vmatpush.bf16.msra.mxu2 %v1798_v10  ;;  %v734_v35 = vpack.c.bf16 %v733_v30, %v732_v29  ;;  %v723_v36 = vpack.c.bf16 %v722_v32, %v722_v32  ;;  %v1776_v38 = vld [vmem:[%s616_s13] sm:$0xff]  ;;  %s1370_s22 = sshll.u32 %s1366_s15, 4  ;;  %s2222_s29 = scalar_lea.hbm %s2828_s7, 16  ;;  %s1371_s22 = int_to_ptr.hbm [resolvable:$true] %s1370_s22 }
  0x6a   : > { %v1941_v40 = vld [vmem:[%s2767_s8] ss:$0 sm:$0xff]  ;;  %s2216_s26 = sshra.s32 %s1371_s22, 4  ;;  %s2217_s26 = int_to_ptr.hbm [resolvable:$true] %s2216_s26 }
  0x6b   : > { %887 = vmatpush.bf16.msra.mxu1 %v1789_v8  ;;  %v1942_v43 = vld [vmem:[%s2765_s6] ss:$0 sm:$0xff]  ;;  %p2223_p8 = scmp.lt.s32.totalorder %s2217_s26, %s2828_s7 }
  0x6c   : > { %806 = vmatpush.bf16.msra.mxu0 %v1781_v9  ;;  %v1944_v7 = vld [vmem:[%s717_s14] ss:$0 sm:$0xff] }
  0x6d   : > { %975 = vmatpush.bf16.msra.mxu2 %v1797_v13  ;;  %v1943_v57 = vld [vmem:[%s2826_s10] ss:$0 sm:$0xff] }
  0x6f   : > { %888 = vmatpush.bf16.msra.mxu1 %v1788_v11 }
  0x70   : > { %807 = vmatpush.bf16.msra.mxu0 %v1780_v12 }
  0x71   : > { %976 = vmatpush.bf16.msra.mxu2 %v1796_v19 }
  0x73   : > { %889 = vmatpush.bf16.msra.mxu1 %v1787_v14 }
  0x74   : > { %808 = vmatpush.bf16.msra.mxu0 %v1779_v17 }
  0x75   : > { %977 = vmatpush.bf16.msra.mxu2 %v1795_v28 }
  0x77   : > { %890 = vmatpush.bf16.msra.mxu1 %v1786_v24 }
  0x78   : > { %809 = vmatpush.bf16.msra.mxu0 %v1778_v26 }
  0x79   : > { %978 = vmatpush.bf16.msra.mxu2 %v1794_v34 }
  0x7b   : > { %891 = vmatpush.bf16.msra.mxu1 %v1785_v31 }
  0x7c   : > { %810 = vmatpush.bf16.msra.mxu0 %v1777_v33 }
  0x7d   : > { %979 = vmatpush.bf16.msra.mxu2 %v1793_v37 }
  0x7e   : > { %892 = vmatmul.bf16.vlgmr.msra.gmra.mxu1 %v734_v35 }
  0x7f   : > { %811 = vmatmul.bf16.vlgmr.msra.gmra.mxu0 %v723_v36 }
  0x80   : > { %980 = vmatmul.bf16.vlgmr.msra.gmra.mxu2 %v1776_v38 }
  0xfb   : > { %v893_v39 = vpop.f32.mrf.mxu1 }
  0xfc   : > { %v812_v41 = vpop.f32.mrf.mxu0  ;;  %v894_v42 = vadd.f32 %v1941_v40, %v893_v39 }
  0xfd   : > { %v813_v47 = vadd.f32 %v1942_v43, %v812_v41 }
  0xfe   : > { %v987_v45 = vpack.c.bf16 %v894_v42, %v894_v42 }
  0xff   : > { %v986_v52 = vpack.c.bf16 %v813_v47, %v813_v47 }
 0x100   : > { %v997_v50 = vunpack.c.l.b16 %v987_v45 }
 0x101   : > { %v1059_v54 = vunpack.c.l.b16 %v986_v52 }
 0x103   : > { %v895_v44 = vpop.f32.mrf.mxu1  ;;  %v1060_v56 = vpack.c.b16 %v1059_v54, %v1059_v54  ;;  %v981_v58 = vpop.f32.mrf.mxu2 }
 0x104   : > { %v896_v46 = vadd.f32 %v1941_v40, %v895_v44  ;;  %v814_v48 = vpop.f32.mrf.mxu0  ;;  %v982_v59 = vadd.f32 %v1943_v57, %v981_v58 }
 0x106   : > { %v988_v49 = vpack.c.bf16 %v896_v46, %v896_v46  ;;  %v989_v60 = vpack.c.bf16 %v982_v59, %v982_v59 }
 0x108   : > { %v998_v51 = vunpack.c.l.b16 %v988_v49  ;;  %v1035_v63 = vunpack.c.l.b16 %v989_v60 }
 0x10a   : > { %v999_v53 = vpack.c.b16 %v998_v51, %v997_v50 }
 0x10b   : > { %v983_v61 = vpop.f32.mrf.mxu2 }
 0x10c   : > { %1125 = vrot.lane.b32.xlu2 %v999_v53, %s2344_s27  ;;  %1063 = vrot.lane.b32.xlu1 %v999_v53, %s2345_s21  ;;  %v1005_v55 = vsel %vm1000_vm0, %v999_v53, 0  ;;  %v984_v62 = vadd.f32 %v1943_v57, %v983_v61 }
 0x10d   : > { %1014 = vmatpush.bf16.xpose.msra.mxu3 %v1005_v55 }
 0x10e   : > { %v990_v0 = vpack.c.bf16 %v984_v62, %v984_v62 }
 0x110   : > { %v1036_v1 = vunpack.c.l.b16 %v990_v0 }
 0x112   : > { %v2660_v2 = vpack.c.b16 %v1036_v1, %v1035_v63 }
 0x114   : > { %1187 = vrot.lane.b32.xlu2 %v999_v53, %s2346_s9  ;;  %1061 = vrot.lane.b32.xlu1 %v1060_v56, %s2345_s21 }
 0x115   : > { %1728 = vmatmul.msk.bf16.vlgmr.msra.gmra.mxu3 %vm1000_vm0, %v986_v52 }
 0x116   : > { %1049 = vmatpush.bf16.msrb.mxu3 %v2660_v2 }
 0x11c   : > { %1185 = vrot.lane.b32.xlu1 %v1060_v56, %s2346_s9 }
 0x166   : > { %v1126_v3 = vpop.permute.xlu2 %1125 }
 0x167   : > { %v1131_v4 = vsel %vm1000_vm0, %v1126_v3, 0 }
 0x168   : > { %1140 = vmatpush.bf16.xpose.msrb.mxu2 %v1131_v4 }
 0x16e   : > { %v1188_v20 = vpop.permute.xlu2 %1187 }
 0x16f   : > { %v1193_v22 = vsel %vm1000_vm0, %v1188_v20, 0 }
 0x17e   : > { %v1064_v5 = vpop.permute.xlu1 %1063 }
 0x17f   : > { %v1069_v6 = vsel %vm1000_vm0, %v1064_v5, 0 }
 0x180   : > { %1078 = vmatpush.bf16.xpose.msra.mxu3 %v1069_v6 }
 0x186   : > { %v1062_v24 = vpop.permute.xlu1 %1061 }
 0x18e   : > { %v1186_v25 = vpop.permute.xlu1 %1185 }
 0x198   : > { %v1016_v8 = vpop.f32.mrf.mxu3 }
 0x199   : > { %v1017_v9 = vadd.f32 %v1944_v7, %v1016_v8 }
 0x19b   : > { %v1021_v10 = vsel %vm1020_vm1, %v1017_v9, -inf }
 0x19c   : > { %1022 = vmax.xlane.f32.xlu0 %v1021_v10 }
 0x1a0   : > { %v1018_v11 = vpop.f32.mrf.mxu3 }
 0x20f   : > { %v1023_v12 = vpop.xlane.xlu0 %1022 }
 0x210   : > { %v1024_v13 = vsub.f32 %v1017_v9, %v1023_v12 }
 0x212   : > { %v1025_v14 = vmul.f32 1.442695, %v1024_v13 }
 0x214   : > { %1946 = vpow2.f32 %v1025_v14 }
 0x21a   : > { %v1947_v15 = vpop.eup %1946 }
 0x21b   : > { %v1027_v16 = vsel %vm1020_vm1, %v1947_v15, 0.0 }
 0x21c   : > { %1028 = vadd.xlane.f32.xlu0 %v1027_v16 }
 0x230   : > { %1123 = vrot.lane.b32.xlu0 %v1060_v56, %s2344_s27 }
 0x28f   : > { %v1029_v17 = vpop.xlane.xlu0 %1028 }
 0x290   : > { %1948 = vrcp.f32 %v1029_v17 }
 0x296   : > { %v1949_v18 = vpop.eup %1948 }
 0x297   : > { %v2668_v19 = vmul.f32 %v1949_v18, %v1947_v15 }
 0x299   : > { %v1032_v21 = vpack.c.bf16 %v2668_v19, %v2668_v19 }
 0x29b   : > { %1729 = vmatmul.msk.bf16.vlgmr.msrb.gmra.mxu3 %vm1020_vm1, %v1032_v21  ;;  %v1808_v21 = vld [vmem:[#allocation15 + $0x38] sm:$0xff] }
 0x29c   : > { %1202 = vmatpush.bf16.xpose.msrb.mxu3 %v1193_v22  ;;  %1316 = vmatpush.bf16.msrb.mxu1 %v1808_v21  ;;  %v1807_v22 = vld [vmem:[#allocation15 + $0x30] sm:$0xff] }
 0x2a0   : > { %1317 = vmatpush.bf16.msrb.mxu1 %v1807_v22 }
 0x2a2   : > { %v1124_v23 = vpop.permute.xlu0 %1123 }
 0x2a3   : > { %1732 = vmatmul.msk.bf16.vlgmr.msrb.gmra.mxu2 %vm1000_vm0, %v1124_v23  ;;  %v1806_v23 = vld [vmem:[#allocation15 + $0x28] sm:$0xff] }
 0x2a4   : > { %1318 = vmatpush.bf16.msrb.mxu1 %v1806_v23 }
 0x2ab   : > { %1730 = vmatmul.msk.bf16.vlgmr.msra.gmra.mxu3 %vm1000_vm0, %v1062_v24  ;;  %v1805_v24 = vld [vmem:[#allocation15 + $0x20] sm:$0xff] }
 0x2ac   : > { %1319 = vmatpush.bf16.msrb.mxu1 %v1805_v24 }
 0x2bb   : > { %1734 = vmatmul.msk.bf16.vlgmr.msrb.gmra.mxu3 %vm1000_vm0, %v1186_v25  ;;  %v1804_v25 = vld [vmem:[#allocation15 + $0x18] sm:$0xff] }
 0x2bc   : > { %1320 = vmatpush.bf16.msrb.mxu1 %v1804_v25 }
 0x31e   : > { %v1051_v26 = vpop.f32.mrf.mxu3 }
 0x31f   : > { %v1055_v28 = vpack.c.bf16 %v1051_v26, %v1051_v26  ;;  %v1803_v26 = vld [vmem:[#allocation15 + $0x10] sm:$0xff] }
 0x320   : > { %1321 = vmatpush.bf16.msrb.mxu1 %v1803_v26 }
 0x321   : > { %1057 = vst.msk [vmem:[#allocation2] sm:$0xf] %vm1056_vm2, %v1055_v28 }
 0x326   : > { %v1053_v29 = vpop.f32.mrf.mxu3  ;;  %v1142_v30 = vpop.f32.mrf.mxu2 }
 0x327   : > { %v1143_v31 = vadd.f32 %v1944_v7, %v1142_v30  ;;  %v1802_v30 = vld [vmem:[#allocation15 + $0x8] sm:$0xff] }
 0x328   : > { %1322 = vmatpush.bf16.msrb.mxu1 %v1802_v30 }
 0x329   : > { %v1146_v32 = vsel %vm1020_vm1, %v1143_v31, -inf }
 0x32a   : > { %1147 = vmax.xlane.f32.xlu1 %v1146_v32 }
 0x32e   : > { %v1080_v33 = vpop.f32.mrf.mxu3  ;;  %v1144_v34 = vpop.f32.mrf.mxu2 }
 0x32f   : > { %v1081_v35 = vadd.f32 %v1944_v7, %v1080_v33 }
 0x331   : > { %v1084_v36 = vsel %vm1020_vm1, %v1081_v35, -inf }
 0x332   : > { %1085 = vmax.xlane.f32.xlu2 %v1084_v36 }
 0x336   : > { %v1082_v37 = vpop.f32.mrf.mxu3 }
 0x33e   : > { %v1204_v38 = vpop.f32.mrf.mxu3 }
 0x33f   : > { %v1205_v39 = vadd.f32 %v1944_v7, %v1204_v38 }
 0x341   : > { %v1208_v40 = vsel %vm1020_vm1, %v1205_v39, -inf }
 0x342   : > { %1209 = vmax.xlane.f32.xlu0 %v1208_v40 }
 0x346   : > { %v1206_v41 = vpop.f32.mrf.mxu3 }
 0x356   : > { %1158 = vrot.lane.b32.xlu0 %v2660_v2, %s2344_s27 }
 0x39d   : > { %v1148_v42 = vpop.xlane.xlu1 %1147 }
 0x39e   : > { %v1149_v43 = vsub.f32 %v1143_v31, %v1148_v42  ;;  %v1801_v31 = vld [vmem:[#allocation15] sm:$0xff] }
 0x39f   : > { %1323 = vmatpush.bf16.msrb.mxu1 %v1801_v31 }
 0x3a0   : > { %v1150_v44 = vmul.f32 1.442695, %v1149_v43 }
 0x3a2   : > { %1950 = vpow2.f32 %v1150_v44 }
 0x3a5   : > { %v1086_v45 = vpop.xlane.xlu2 %1085 }
 0x3a6   : > { %v1087_v46 = vsub.f32 %v1081_v35, %v1086_v45 }
 0x3a8   : > { %v1951_v47 = vpop.eup %1950  ;;  %v1088_v48 = vmul.f32 1.442695, %v1087_v46 }
 0x3a9   : > { %v1152_v49 = vsel %vm1020_vm1, %v1951_v47, 0.0 }
 0x3aa   : > { %1952 = vpow2.f32 %v1088_v48  ;;  %1153 = vadd.xlane.f32.xlu1 %v1152_v49 }
 0x3b0   : > { %v1953_v50 = vpop.eup %1952 }
 0x3b1   : > { %v1090_v51 = vsel %vm1020_vm1, %v1953_v50, 0.0 }
 0x3b2   : > { %1091 = vadd.xlane.f32.xlu2 %v1090_v51 }
 0x3b5   : > { %v1210_v52 = vpop.xlane.xlu0 %1209 }
 0x3b6   : > { %v1211_v53 = vsub.f32 %v1205_v39, %v1210_v52 }
 0x3b8   : > { %v1212_v54 = vmul.f32 1.442695, %v1211_v53 }
 0x3ba   : > { %1954 = vpow2.f32 %v1212_v54 }
 0x3c0   : > { %v1955_v55 = vpop.eup %1954 }
 0x3c1   : > { %v1214_v56 = vsel %vm1020_vm1, %v1955_v55, 0.0 }
 0x3c2   : > { %1215 = vadd.xlane.f32.xlu1 %v1214_v56 }
 0x3c8   : > { %v1159_v57 = vpop.permute.xlu0 %1158 }
 0x3c9   : > { %1171 = vmatpush.bf16.msra.mxu2 %v1159_v57 }
 0x3ca   : > { %1096 = vrot.lane.b32.xlu2 %v2660_v2, %s2345_s21 }
 0x3db   : > { %1220 = vrot.lane.b32.xlu1 %v2660_v2, %s2346_s9 }
 0x41d   : > { %v1154_v58 = vpop.xlane.xlu1 %1153 }
 0x41e   : > { %1956 = vrcp.f32 %v1154_v58 }
 0x424   : > { %v1957_v59 = vpop.eup %1956 }
 0x425   : > { %v1156_v60 = vmul.f32 %v1957_v59, %v1951_v47  ;;  %v1092_v61 = vpop.xlane.xlu2 %1091 }
 0x426   : > { %1958 = vrcp.f32 %v1092_v61 }
 0x427   : > { %v1157_v62 = vpack.c.bf16 %v1156_v60, %v1156_v60 }
 0x429   : > { %1733 = vmatmul.msk.bf16.vlgmr.msra.gmra.mxu2 %vm1020_vm1, %v1157_v62 }
 0x42c   : > { %v1959_v63 = vpop.eup %1958 }
 0x42d   : > { %v1094_v0 = vmul.f32 %v1959_v63, %v1953_v50  ;;  %v1097_v1 = vpop.permute.xlu2 %1096 }
 0x42e   : > { %1109 = vmatpush.bf16.msrb.mxu0 %v1097_v1 }
 0x42f   : > { %v1095_v3 = vpack.c.bf16 %v1094_v0, %v1094_v0  ;;  %v1122_v2 = vadd.f32 %v1094_v0, %v2668_v19 }
 0x431   : > { %1731 = vmatmul.msk.bf16.vlgmr.msrb.gmra.mxu0 %vm1020_vm1, %v1095_v3  ;;  %v1184_v6 = vadd.f32 %v1156_v60, %v1122_v2 }
 0x435   : > { %v1216_v4 = vpop.xlane.xlu1 %1215 }
 0x436   : > { %1960 = vrcp.f32 %v1216_v4 }
 0x43c   : > { %v1961_v5 = vpop.eup %1960 }
 0x43d   : > { %v1218_v7 = vmul.f32 %v1961_v5, %v1955_v55 }
 0x43f   : > { %v1246_v8 = vadd.f32 %v1218_v7, %v1184_v6  ;;  %v1219_v11 = vpack.c.bf16 %v1218_v7, %v1218_v7 }
 0x441   : > { %v1332_v9 = vmul.f32 0.25, %v1246_v8 }
 0x443   : > { %1333 = vst.msk [vmem:[%s714_s16] sm:$0xff] %vm1020_vm1, %v1332_v9 }
 0x44d   : > { %v1221_v10 = vpop.permute.xlu1 %1220 }
 0x44e   : > { %1233 = vmatpush.bf16.msra.mxu0 %v1221_v10 }
 0x451   : > { %1735 = vmatmul.msk.bf16.vlgmr.msra.gmra.mxu0 %vm1020_vm1, %v1219_v11 }
 0x4ac   : > { %v1173_v12 = vpop.f32.mrf.mxu2 }
 0x4ad   : > { %v1177_v17 = vpack.c.bf16 %v1173_v12, %v1173_v12 }
 0x4ae   : > { %v1111_v13 = vpop.f32.mrf.mxu0 }
 0x4af   : > { %v1115_v14 = vpack.c.bf16 %v1111_v13, %v1111_v13 }
 0x4b1   : > { %1117 = vrot.lane.b32.xlu2 %v1115_v14, %s2346_s9 }
 0x4b4   : > { %v1175_v15 = vpop.f32.mrf.mxu2 }
 0x4b6   : > { %v1113_v16 = vpop.f32.mrf.mxu0 }
 0x4b9   : > { %1179 = vrot.lane.b32.xlu2 %v1177_v17, %s2344_s27  ;;  %s2218_s27 = scalar_lea.hbm %s2217_s26, 8 }
 0x4ba   : > { %p2219_p3 = scmp.ne.s32.totalorder %s2217_s26, %s2218_s27  ;;  %p2224_p10 = scmp.lt.s32.totalorder %s2222_s29, %s2218_s27 }
 0x4bc   : > { %p2220_p5 = pnand %p2219_p3, %p2510_p2  ;;  %p2225_p11 = por %p2224_p10, %p2223_p8 }
 0x4be   : > { %p2221_p6 = pneg %p2220_p5 }
 0x4c0   : > { %p2226_p12 = pnand %p2225_p11, %p2221_p6 }
 0x4ce   : > { %v1235_v18 = vpop.f32.mrf.mxu0 }
 0x4cf   : > { %v1239_v19 = vpack.c.bf16 %v1235_v18, %v1235_v18 }
 0x4d1   : > { %1241 = vrot.lane.b32.xlu0 %v1239_v19, %s2345_s21 }
 0x4d6   : > { %v1237_v20 = vpop.f32.mrf.mxu0 }
 0x50b   : > { %v1118_v28 = vpop.permute.xlu2 %1117 }
 0x50c   : > { %1121 = vst.msk [vmem:[#allocation2] sm:$0xf] %vm1120_vm3, %v1118_v28 }
 0x513   : > { %v1180_v29 = vpop.permute.xlu2 %1179 }
 0x514   : > { %1183 = vst.msk [vmem:[#allocation2] sm:$0xf] %vm1182_vm4, %v1180_v29 }
 0x543   : > { %v1242_v32 = vpop.permute.xlu0 %1241 }
 0x544   : > { %1245 = vst.msk [vmem:[#allocation2] sm:$0xf] %vm1244_vm5, %v1242_v32 }
 0x54b   : > { %v1247_v33 = vld [vmem:[#allocation2] sm:$0xf] }
 0x54c   : > { %1324 = vmatmul.bf16.vlgmr.msrb.gmra.mxu1 %v1247_v33 }
 0x54d   : > { %2229 = shalt.err (!%p2226_p12)
}
 0x54e   : > { %1838 = dma.vmem_to_hbm [thread:$0]  (%p2510_p2), %s1369_s19, 128, %s1371_s22, %s1340_s4  }
 0x54f   : > { %s2829_s9 = sld [smem:[#allocation44_spill]]  ;;  %s707_s28 = scalar_lea.vmem [#allocation17], %s2593_s24 }
 0x550   : > { %s2830_s10 = sld [smem:[#allocation45_spill]]  ;;  %s1353_s13 = sshll.u32 %s707_s28, 4  ;;  %s1354_s13 = int_to_ptr.vmem [resolvable:$true] %s1353_s13 }
 0x551   : > { %s1335_s19 = scalar_lea.sflag [#allocation5], %s2590_s0 }
 0x555   : > { %v1945_v34 = vld [vmem:[%s2829_s9] ss:$0 sm:$0xff] }
 0x556   : > { %s1351_s16 = scalar_lea.hbm %s2830_s10, %s1770_s23  ;;  %s2250_s24 = scalar_lea.hbm %s2830_s10, 16 }
 0x557   : > { %s1355_s15 = sshll.u32 %s1351_s16, 4  ;;  %s1356_s15 = int_to_ptr.hbm [resolvable:$true] %s1355_s15 }
 0x558   : > { %s2244_s22 = sshra.s32 %s1356_s15, 4  ;;  %s2245_s22 = int_to_ptr.hbm [resolvable:$true] %s2244_s22 }
 0x559   : > { %s2246_s4 = scalar_lea.hbm %s2245_s22, 8  ;;  %p2251_p9 = scmp.lt.s32.totalorder %s2245_s22, %s2830_s10 }
 0x55a   : > { %p2247_p13 = scmp.ne.s32.totalorder %s2245_s22, %s2246_s4  ;;  %p2252_p1 = scmp.lt.s32.totalorder %s2250_s24, %s2246_s4 }
 0x55c   : > { %p2248_p0 = pnand %p2247_p13, %p2510_p2  ;;  %p2253_p3 = por %p2252_p1, %p2251_p9 }
 0x55e   : > { %p2249_p4 = pneg %p2248_p0 }
 0x560   : > { %p2254_p5 = pnand %p2253_p3, %p2249_p4 }
 0x5c9   : > { %v1325_v35 = vpop.f32.mrf.mxu1 }
 0x5ca   : > { %v1326_v36 = vadd.f32 %v1945_v34, %v1325_v35 }
 0x5cc   : > { %v1330_v37 = vmul.f32 %v1326_v36, %v2634_v27 }
 0x5ce   : > { %1331 = vst [vmem:[%s707_s28] sm:$0xff] %v1330_v37 }
 0x5cf   : > { %2257 = shalt.err (!%p2254_p5)
}
 0x5d0   : > { %1837 = dma.vmem_to_hbm [thread:$0]  (%p2510_p2), %s1354_s13, 128, %s1356_s15, %s1335_s19  }
 0x5d1   : > { %v1327_v27 = vpop.f32.mrf.mxu1 }
 0x5d2 PF: > { %s2831_s0 = sld [smem:[#allocation28_spill]]  ;;  %p2833_p6 = scmp.ge.s32.totalorder %s2336_s18, 2 }
 0x5d4   : > { %p1868_p8 = pnand %p2833_p6, %p2517_p7 }
 0x5d6   : > { %p1869_p10 = pneg %p1868_p8 }
 0x5d8   : > { %s1382_s29 = sand.u32 1, %s2831_s0  }
 0x5d9   : > { %s1383_s20 = scalar_lea.sflag [#allocation5], %s1382_s29 }
 0x5da   : > { %2307 = dma.done.wait (%p1869_p10), %s1383_s20, 128  }
 0x5db   : > { %2309 = vsyncadd (%p1869_p10), %s1383_s20, 4294967168  ;;  %s1393_s1 = scalar_lea.sflag [#allocation19], %s1382_s29 }
 0x5dc   : > { %2311 = dma.done.wait (%p1869_p10), %s1393_s1, 128  }
 0x5dd   : > { %2313 = vsyncadd (%p1869_p10), %s1393_s1, 4294967168  ;;  %s42_s18 = sadd.s32 1, %s2336_s18   ;;  %s2834_s17 = sld [smem:[#allocation29_spill]] }
 0x5de   : > { %p39_p11 = scmp.ge.s32.totalorder %s42_s18, 4   ;;  %s2835_s15 = sld [smem:[#allocation34_spill]] }
 0x5df   : > { %s2836_s16 = sld [smem:[#allocation31_spill]]  ;;  %s2838_s29 = smov %s2320_s30 }
 0x5e0   : > { %s2837_s12 = sld [smem:[#allocation32_spill]] }
 0x5e2   :  { %41 = sbr.rel (!%p39_p11) target bundleno = 26 (0x1a), region = 190 }
 0x5e3   : > { %s2839_s30 = smov %s2834_s17 }
 0x5e6   : > { %s2840_s17 = smov %s2837_s12 }
 0x5e7   :  { %1399 = vsyncpa [#allocation4], 1 }
 0x5e8   :  { %1401 = vsyncpa [#allocation4 + $0x1], 1 }
 0x5e9   :  { %1402 = vsyncpa [#allocation7], 1 }
 0x5ea   :  { %1404 = vsyncpa [#allocation7 + $0x1], 1 }
 0x5eb   :  { %1405 = vsyncpa [#allocation10], 1 }
 0x5ec   :  { %1407 = vsyncpa [#allocation10 + $0x1], 1 }
 0x5ed   :  { %1408 = vsyncpa [#allocation13], 1 }
 0x5ee   :  { %1409 = vsyncpa [#allocation16], 1 }
 0x5ef   :  { %1410 = vsyncpa [#allocation5], 1 }
 0x5f0   :  { %1412 = vsyncpa [#allocation5 + $0x1], 1 }
 0x5f1   :  { %1413 = vsyncpa [#allocation19], 1 }
 0x5f2   :  { %1415 = vsyncpa [#allocation19 + $0x1], 1 }

</bundles_post_ra>
